<compile_context>
chip_gen: v7x
topology: tpu7x:2x2x1
jax: 0.10.0
libtpu: 0.0.40
codegen_flags: <defaults>
</compile_context>

<pallas_src>
import functools

import jax
import jax.numpy as jnp
from jax.experimental import pallas as pl
from jax.experimental.pallas import tpu as pltpu

GAMMA = 2.0
ALPHA = 0.75
EPSILON = 1e-9

# Conservative per-tile VMEM working-set budget (bytes) and scoped limit.
_VMEM_BUDGET_BYTES = 24 * 1024 * 1024
_VMEM_LIMIT_BYTES = 48 * 1024 * 1024


def _focal_kernel(logits_ref, target_ref, out_ref, *, gamma, alpha, epsilon,
                  batch_size, tile_b):
    i = pl.program_id(0)

    logits = logits_ref[...].astype(jnp.float32)              # (TB, C) f32
    tgt = target_ref[...]                                      # (TB, 1) int32
    tb, c = logits.shape

    # Numerically-stable softmax pieces; exp is the only full-tile
    # transcendental (EUP).
    m = jnp.max(logits, axis=-1, keepdims=True)                # (TB, 1)
    e = jnp.exp(logits - m)                                     # (TB, C)
    sum_e = jnp.sum(e, axis=-1, keepdims=True)                  # (TB, 1)

    # Fused gather of the target-class numerator: no separate f32 one-hot.
    cls_ids = jax.lax.broadcasted_iota(jnp.int32, (tb, c), 1)
    e_t = jnp.sum(jnp.where(cls_ids == tgt, e, 0.0),
                  axis=-1, keepdims=True)                       # (TB, 1)

    # Valid-target indicator straight from the (TB,1) column (no XLU reduce).
    hit = jnp.logical_and(tgt >= 0, tgt < c).astype(jnp.float32)

    p_t = e_t / sum_e                                           # (TB, 1)

    if gamma == 2.0:
        one_minus = 1.0 - p_t
        focal_w = one_minus * one_minus                         # VALU square
    else:
        focal_w = jnp.power(1.0 - p_t, jnp.float32(gamma))

    loss_rows = (-alpha) * hit * focal_w * jnp.log(p_t + epsilon)  # (TB, 1)

    # Mask rows of the (possibly ragged) last tile that fall past batch_size.
    row_ids = i * tile_b + jax.lax.broadcasted_iota(jnp.int32, (tb, 1), 0)
    loss_rows = jnp.where(row_ids < batch_size, loss_rows, 0.0)

    partial = jnp.sum(loss_rows, axis=0, keepdims=True)         # (1, 1)

    # Per-block partial sum written into element [0, 0] of this block's
    # (8, 128) output tile; wrapper does the final tiny reduction / divide.
    rr = jax.lax.broadcasted_iota(jnp.int32, (8, 128), 0)
    cc = jax.lax.broadcasted_iota(jnp.int32, (8, 128), 1)
    pblock = jnp.broadcast_to(partial, (8, 128))
    out_ref[...] = jnp.where((rr == 0) & (cc == 0), pblock, 0.0)


def neural_focal(logits, target, gamma=GAMMA, alpha=ALPHA, epsilon=EPSILON,
                 tile_rows=None):
    """logits: (B, C) float (any dtype); target: (B,) int.
    Returns scalar mean focal loss (matches NeuralFocal.forward).
    `tile_rows` is a test hook to force a specific batch-tile size."""
    b, c = logits.shape
    target2d = target.astype(jnp.int32).reshape(b, 1)

    itemsize = logits.dtype.itemsize
    sublane = max(8, 32 // max(1, itemsize))    # 8 f32 / 16 bf16 / 32 int8

    # Per-row VMEM working-set estimate (deliberately pessimistic):
    #   ~6 live full-tile f32 temporaries            : 6 * c * 4
    #   ~12 lane-padded (TB,1) column temporaries    : 12 * 512
    #   double-buffered native-dtype logits block    : 2 * c * itemsize
    #   double-buffered lane-padded int32 target blk : 2 * 512
    row_bytes = 6 * c * 4 + 12 * 512 + 2 * c * itemsize + 2 * 512
    tb_cap = max(sublane, _VMEM_BUDGET_BYTES // row_bytes)
    tb_cap = max(sublane, (tb_cap // sublane) * sublane)

    if tile_rows is not None:
        tb = min(int(tile_rows), b) if tile_rows < b else b
        if tb < b:
            tb = max(sublane, (tb // sublane) * sublane)
    elif b <= tb_cap:
        tb = b                                   # single full-extent block
    else:
        tb = tb_cap

    nblocks = pl.cdiv(b, tb)

    kernel = functools.partial(
        _focal_kernel, gamma=float(gamma), alpha=float(alpha),
        epsilon=float(epsilon), batch_size=b, tile_b=tb)

    out = pl.pallas_call(
        kernel,
        out_shape=jax.ShapeDtypeStruct((nblocks * 8, 128), jnp.float32),
        grid=(nblocks,),
        in_specs=[
            pl.BlockSpec((tb, c), lambda i: (i, 0)),   # logits tile (native dtype)
            pl.BlockSpec((tb, 1), lambda i: (i, 0)),   # target tile
        ],
        out_specs=pl.BlockSpec((8, 128), lambda i: (i, 0)),
        compiler_params=pltpu.CompilerParams(
            dimension_semantics=("parallel",),          # shards across TCs on v7x
            vmem_limit_bytes=_VMEM_LIMIT_BYTES),
    )(logits, target2d)

    return jnp.sum(out) / jnp.float32(b)


def _reference(logits, target, gamma=GAMMA, alpha=ALPHA, epsilon=EPSILON):
    p = jax.nn.softmax(logits.astype(jnp.float32), axis=-1)
    one_hot = jax.nn.one_hot(target, logits.shape[-1], dtype=jnp.float32)
    loss = -alpha * one_hot * jnp.power(1.0 - p, gamma) * jnp.log(p + epsilon)
    return jnp.mean(jnp.sum(loss, axis=1))


if __name__ == "__main__":
    num_cls = 32  # label_size
    key = jax.random.PRNGKey(0)

    # Case 1: single full-extent tile (B == tile).
    k1, k2, k3, k4 = jax.random.split(key, 4)
    logits_a = jax.random.normal(k1, (8, num_cls), dtype=jnp.float32)
    target_a = jax.random.randint(k2, (8,), 0, num_cls, dtype=jnp.int32)
    out_a = jax.block_until_ready(neural_focal(logits_a, target_a))
    ref_a = jax.block_until_ready(_reference(logits_a, target_a))
    assert jnp.allclose(out_a, ref_a, atol=1e-5, rtol=1e-5), (out_a, ref_a)

    # Case 2: ragged last tile (B % tile != 0) exercised via the test hook —
    # locks in the no-pad + in-kernel row-mask path.
    logits_b = jax.random.normal(k3, (20, num_cls), dtype=jnp.float32)
    target_b = jax.random.randint(k4, (20,), 0, num_cls, dtype=jnp.int32)
    out_b = jax.block_until_ready(neural_focal(logits_b, target_b, tile_rows=8))
    ref_b = jax.block_until_ready(_reference(logits_b, target_b))
    assert jnp.allclose(out_b, ref_b, atol=1e-5, rtol=1e-5), (out_b, ref_b)

    print("KERNEL_OK")
</pallas_src>

<mosaic_0001>
module attributes {stable_mosaic.version = 11 : i64} {
  func.func @_focal_kernel(%arg0: i32, %arg1: memref<8x32xf32, #tpu.memory_space<vmem>>, %arg2: memref<8x1xi32, #tpu.memory_space<vmem>>, %arg3: memref<8x128xf32, #tpu.memory_space<vmem>>) attributes {dimension_semantics = [#tpu.dimension_semantics<parallel>], iteration_bounds = array<i64: 1>, scalar_prefetch = 0 : i64, scratch_operands = 0 : i64, tpu.core_type = #tpu.core_type<tc>, window_params = [{transform_indices = @transform_0, window_bounds = array<i64: 8, 32>}, {transform_indices = @transform_1, window_bounds = array<i64: 8, 1>}, {transform_indices = @transform_2, window_bounds = array<i64: 8, 128>}]} {
    %c0 = arith.constant 0 : index
    %c0_0 = arith.constant 0 : index
    %0 = vector.load %arg1[%c0, %c0_0] : memref<8x32xf32, #tpu.memory_space<vmem>>, vector<8x32xf32>
    %c0_1 = arith.constant 0 : index
    %c0_2 = arith.constant 0 : index
    %1 = vector.load %arg2[%c0_1, %c0_2] : memref<8x1xi32, #tpu.memory_space<vmem>>, vector<8x1xi32>
    %cst = arith.constant dense<0xFF800000> : vector<8xf32>
    %2 = vector.multi_reduction <maximumf>, %0, %cst [1] : vector<8x32xf32> to vector<8xf32>
    %3 = vector.shape_cast %2 : vector<8xf32> to vector<8x1xf32>
    %4 = vector.broadcast %3 : vector<8x1xf32> to vector<8x32xf32>
    %5 = arith.subf %0, %4 : vector<8x32xf32>
    %6 = math.exp %5 : vector<8x32xf32>
    %cst_3 = arith.constant dense<0.000000e+00> : vector<8xf32>
    %7 = vector.multi_reduction <add>, %6, %cst_3 [1] : vector<8x32xf32> to vector<8xf32>
    %8 = vector.shape_cast %7 : vector<8xf32> to vector<8x1xf32>
    %9 = tpu.iota {dimensions = array<i32: 1>} : vector<8x32xi32>
    %10 = vector.broadcast %1 : vector<8x1xi32> to vector<8x32xi32>
    %11 = arith.cmpi eq, %9, %10 : vector<8x32xi32>
    %cst_4 = arith.constant 0.000000e+00 : f32
    %12 = vector.broadcast %cst_4 : f32 to vector<8x32xf32>
    %13 = arith.select %11, %6, %12 : vector<8x32xi1>, vector<8x32xf32>
    %cst_5 = arith.constant dense<0.000000e+00> : vector<8xf32>
    %14 = vector.multi_reduction <add>, %13, %cst_5 [1] : vector<8x32xf32> to vector<8xf32>
    %15 = vector.shape_cast %14 : vector<8xf32> to vector<8x1xf32>
    %c0_i32 = arith.constant 0 : i32
    %16 = vector.broadcast %c0_i32 : i32 to vector<8x1xi32>
    %17 = arith.cmpi sge, %1, %16 : vector<8x1xi32>
    %c32_i32 = arith.constant 32 : i32
    %18 = vector.broadcast %c32_i32 : i32 to vector<8x1xi32>
    %19 = arith.cmpi slt, %1, %18 : vector<8x1xi32>
    %20 = arith.andi %17, %19 : vector<8x1xi1>
    %21 = arith.extui %20 : vector<8x1xi1> to vector<8x1xi32>
    %22 = arith.sitofp %21 : vector<8x1xi32> to vector<8x1xf32>
    %23 = arith.divf %15, %8 : vector<8x1xf32>
    %cst_6 = arith.constant 1.000000e+00 : f32
    %24 = vector.broadcast %cst_6 : f32 to vector<8x1xf32>
    %25 = arith.subf %24, %23 : vector<8x1xf32>
    %26 = arith.mulf %25, %25 : vector<8x1xf32>
    %cst_7 = arith.constant -7.500000e-01 : f32
    %27 = vector.broadcast %cst_7 : f32 to vector<8x1xf32>
    %28 = arith.mulf %27, %22 : vector<8x1xf32>
    %29 = arith.mulf %28, %26 : vector<8x1xf32>
    %cst_8 = arith.constant 9.99999971E-10 : f32
    %30 = vector.broadcast %cst_8 : f32 to vector<8x1xf32>
    %31 = arith.addf %23, %30 : vector<8x1xf32>
    %32 = math.log %31 : vector<8x1xf32>
    %33 = arith.mulf %29, %32 : vector<8x1xf32>
    %c8_i32 = arith.constant 8 : i32
    %34 = arith.muli %arg0, %c8_i32 : i32
    %35 = tpu.iota {dimensions = array<i32: 0>} : vector<8x1xi32>
    %36 = vector.broadcast %34 : i32 to vector<8x1xi32>
    %37 = arith.addi %36, %35 : vector<8x1xi32>
    %c8_i32_9 = arith.constant 8 : i32
    %38 = vector.broadcast %c8_i32_9 : i32 to vector<8x1xi32>
    %39 = arith.cmpi slt, %37, %38 : vector<8x1xi32>
    %cst_10 = arith.constant 0.000000e+00 : f32
    %40 = vector.broadcast %cst_10 : f32 to vector<8x1xf32>
    %41 = arith.select %39, %33, %40 : vector<8x1xi1>, vector<8x1xf32>
    %cst_11 = arith.constant dense<0.000000e+00> : vector<1xf32>
    %42 = vector.multi_reduction <add>, %41, %cst_11 [0] : vector<8x1xf32> to vector<1xf32>
    %43 = vector.shape_cast %42 : vector<1xf32> to vector<1x1xf32>
    %44 = tpu.iota {dimensions = array<i32: 0>} : vector<8x128xi32>
    %45 = tpu.iota {dimensions = array<i32: 1>} : vector<8x128xi32>
    %46 = vector.shape_cast %43 : vector<1x1xf32> to vector<1x1xf32>
    %47 = vector.broadcast %46 : vector<1x1xf32> to vector<8x128xf32>
    %c0_i32_12 = arith.constant 0 : i32
    %48 = vector.broadcast %c0_i32_12 : i32 to vector<8x128xi32>
    %49 = arith.cmpi eq, %44, %48 : vector<8x128xi32>
    %c0_i32_13 = arith.constant 0 : i32
    %50 = vector.broadcast %c0_i32_13 : i32 to vector<8x128xi32>
    %51 = arith.cmpi eq, %45, %50 : vector<8x128xi32>
    %52 = arith.andi %49, %51 : vector<8x128xi1>
    %cst_14 = arith.constant 0.000000e+00 : f32
    %53 = vector.broadcast %cst_14 : f32 to vector<8x128xf32>
    %54 = arith.select %52, %47, %53 : vector<8x128xi1>, vector<8x128xf32>
    %c0_15 = arith.constant 0 : index
    %c0_16 = arith.constant 0 : index
    %55 = vector.load %arg3[%c0_15, %c0_16] : memref<8x128xf32, #tpu.memory_space<vmem>>, vector<8x128xf32>
    tpu.vector_store %arg3[%c0_15, %c0_16], %54 {strides = array<i32>} : memref<8x128xf32, #tpu.memory_space<vmem>>, vector<8x128xf32>,
    return
  }
  func.func @transform_0(%arg0: i32) -> (i32, i32) {
    %c0_i32 = arith.constant 0 : i32
    %c0_i32_0 = arith.constant 0 : i32
    return %arg0, %c0_i32 : i32, i32
  }
  func.func @transform_1(%arg0: i32) -> (i32, i32) {
    %c0_i32 = arith.constant 0 : i32
    %c0_i32_0 = arith.constant 0 : i32
    return %arg0, %c0_i32 : i32, i32
  }
  func.func @transform_2(%arg0: i32) -> (i32, i32) {
    %c0_i32 = arith.constant 0 : i32
    %c0_i32_0 = arith.constant 0 : i32
    return %arg0, %c0_i32 : i32, i32
  }
}

</mosaic_0001>

<bundles_post_ra>
// kernel: tpu_custom_call.1
= control target key start
LH: loop header
LB: loop body
LE: loop exit
PB: predicated region body
PF: predicated region fallthrough
CT: control target
= control target key end

     0   :  { %vm14_vm0 = vcmask 261120   ;;  %v124_v2 = vmov 0   ;;  %s163_s0 = inlined_call_operand.vmem [shape: f32[8,32], index: 0, kind: input, shape index: {}]   ;;  %s164_s1 = inlined_call_operand.vmem [shape: s32[8,1], index: 1, kind: input, shape index: {}]   ;;  %s165_s2 = inlined_call_operand.hbm [shape: f32[8,128], index: 2, kind: output, shape index: {}]  }
   0x1   :  { %v12_v0 = vld [vmem:[%s163_s0] sm:$0xff]  ;;  %92 = vset.pattern.permute.xlu0 %v124_v2  ;;  %93 = vset.pattern.permute.xlu1 %v124_v2 }
   0x2   :  { %v15_v1 = vsel %vm14_vm0, %v12_v0, -inf }
   0x3   :  { %7 = vsyncpa [#allocation3], 0  ;;  %16 = vmax.xlane.f32.xlu0 %v15_v1  ;;  %v13_v3 = vld [vmem:[%s164_s1] sm:$0xff]  ;;  %v24_v7 = vlaneseq  ;;  %v125_v20 = vmov 0.0   ;;  %vm56_vm5 = vcmask 7168   ;;  %s126_s0 = smov [#allocation2]  }
   0x4   :  { %vm34_vm2 = vcmp.ge.s32.totalorder %v13_v3, 0  ;;  %vm35_vm3 = vcmp.lt.s32.totalorder %v13_v3, 32  ;;  %s80_s1 = sshll.u32 %s126_s0, 4  ;;  %s81_s1 = int_to_ptr.vmem [resolvable:$true] %s80_s1 }
   0x5   :  { %v25_v8 = vand.u32 127, %v24_v7  ;;  %vm36_vm4 = vmand %vm34_vm2, %vm35_vm3  ;;  %v51_v35 = vshrl.u32 %v24_v7, 7  ;;  %s100_s13 = scalar_lea.vmem %s81_s1, 128  ;;  %p105_p1 = scmp.lt.s32.totalorder %s81_s1, %s81_s1 }
   0x6   :  { %v88_v21 = vsel %vm36_vm4, 1.0, %v125_v20  ;;  %p101_p0 = scmp.ne.s32.totalorder %s81_s1, %s100_s13  ;;  %p106_p2 = scmp.lt.s32.totalorder %s100_s13, %s100_s13 }
   0x7   :  { %v43_v22 = vmul.f32 -0.75, %v88_v21  ;;  %vm69_vm6 = vcmp.eq.s32.totalorder %v51_v35, 0  ;;  %vm70_vm7 = vcmp.eq.s32.totalorder %v25_v8, 0 }
   0x8   :  { %vm71_vm8 = vmand %vm69_vm6, %vm70_vm7  ;;  %p107_p3 = por %p106_p2, %p105_p1 }
   0xa   :  { %p108_p4 = pnand %p107_p3, %p101_p0 }
  0x19   :  { %27 = vperm.xlu0 %92, %v13_v3  }
  0x90   :  { %v17_v4 = vpop.xlane.xlu0 %16 }
  0x91   :  { %v18_v5 = vsub.f32 %v12_v0, %v17_v4 }
  0x93   :  { %v19_v6 = vmul.f32 1.442695, %v18_v5 }
  0x95   :  { %94 = vpow2.f32 %v19_v6 }
  0x98   :  { %v28_v9 = vpop.permute.xlu0 %27 }
  0x99   :  { %vm29_vm1 = vcmp.eq.s32.totalorder %v25_v8, %v28_v9 }
  0x9f   :  { %v95_v10 = vpop.eup %94 }
  0xa0   :  { %v21_v11 = vsel %vm14_vm0, %v95_v10, 0.0  ;;  %v30_v12 = vsel %vm29_vm1, %v95_v10, 0.0 }
  0xa1   :  { %22 = vadd.xlane.f32.xlu1 %v21_v11  ;;  %v31_v13 = vsel %vm14_vm0, %v30_v12, 0.0 }
  0xa5   :  { %32 = vadd.xlane.f32.xlu1 %v31_v13 }
 0x12e   :  { %v23_v14 = vpop.xlane.xlu1 %22 }
 0x12f   :  { %96 = vrcp.f32 %v23_v14 }
 0x132   :  { %v33_v16 = vpop.xlane.xlu1 %32 }
 0x139   :  { %v97_v15 = vpop.eup %96 }
 0x13a   :  { %v40_v17 = vmul.f32 %v97_v15, %v33_v16 }
 0x13c   :  { %v45_v18 = vadd.f32 1e-09, %v40_v17  ;;  %v41_v19 = vsub.f32 1.0, %v40_v17 }
 0x13e   :  { %98 = vlog2.f32 %v45_v18  ;;  %v42_v23 = vmul.f32 %v41_v19, %v41_v19 }
 0x140   :  { %v44_v25 = vmul.f32 %v43_v22, %v42_v23 }
 0x148   :  { %v99_v24 = vpop.eup %98 }
 0x149   :  { %v47_v26 = vmul.f32 0.6931472, %v99_v24 }
 0x14b   :  { %v48_v27 = vmul.f32 %v47_v26, %v44_v25 }
 0x14d   :  { %v57_v28 = vsel %vm56_vm5, %v48_v27, 0.0 }
 0x14e   :  { %v58_v29 = vrot.slane %v57_v28, 4 }
 0x150   :  { %v59_v30 = vadd.f32 %v58_v29, %v57_v28 }
 0x152   :  { %v60_v31 = vrot.slane %v59_v30, 2 }
 0x154   :  { %v61_v32 = vadd.f32 %v60_v31, %v59_v30 }
 0x156   :  { %v62_v33 = vrot.slane %v61_v32, 1 }
 0x158   :  { %v63_v34 = vadd.f32 %v62_v33, %v61_v32 }
 0x15a   :  { %66 = vperm.xlu1 %93, %v63_v34  }
 0x1d9   :  { %v67_v36 = vpop.permute.xlu1 %66 }
 0x1da   :  { %v72_v37 = vsel %vm71_vm8, %v67_v36, 0.0 }
 0x1db   :  { %73 = vst [vmem:[#allocation2] sm:$0xff] %v72_v37 }
 0x1dc   :  { %111 = shalt.err (!%p108_p4)
}
 0x1dd   :  { %s112_s16 = scalar_lea.hbm %s165_s2, 128 }
 0x1de   :  { %p113_p5 = scmp.ne.s32.totalorder %s165_s2, %s112_s16  ;;  %p116_p6 = scmp.lt.u32.totalorder %s112_s16, %s165_s2 }
 0x1e0   :  { %p118_p7 = pnand %p116_p6, %p113_p5 }
 0x1e2   :  { %121 = shalt.err (!%p118_p7)
}
 0x1e3   :  { %83 = dma.vmem_to_hbm [thread:$0]  %s81_s1, 128, %s165_s2, [#allocation3]  }
 0x1e4   :  { %122 = dma.done.wait [#allocation3], 128  }
 0x1e5   :  { %123 = vsyncadd [#allocation3], 4294967168 }
 0x1e6   :  { %87 = vsyncpa [#allocation3], 1 }

</bundles_post_ra>
